<compile_context>
chip_gen: v6e
topology: v6e:2x2x1
jax: 0.10.0
libtpu: 0.0.40
codegen_flags: <defaults>
</compile_context>

<pallas_src>
import functools

import jax
import jax.numpy as jnp
from jax.experimental import pallas as pl
from jax.experimental.pallas import tpu as pltpu


def _gap_kernel(x_ref, o_ref, *, inv_hw):
    # x_ref: (bn, C, HW) block in VMEM, HW on the lane axis.
    # o_ref: (bn, 1, C)  block in VMEM, C on the lane axis (lane-dense store).
    x = x_ref[...]
    # Accumulate in f32 without materializing an upcast copy of the whole tile;
    # lane-dim reduce is one cross-lane reduce per (n, c) row after VPU adds.
    s = jnp.sum(x, axis=-1, dtype=jnp.float32)          # (bn, C)
    o_ref[...] = (s * inv_hw).astype(o_ref.dtype)[:, None, :]


def global_avg_pool2d(x, *, target_block_bytes=6 * 1024 * 1024):
    """Equivalent of F.avg_pool2d(x, kernel_size=x.shape[2:]). x: (N, C, H, W)."""
    N, C, H, W = x.shape
    HW = H * W
    inv_hw = 1.0 / float(HW)

    # Free row-major reshape: lane dim becomes H*W (>=128 for most real shapes).
    x3 = x.reshape(N, C, HW)

    itemsize = x3.dtype.itemsize
    per_batch_bytes = C * HW * itemsize

    # Put several batch elements in one block, targeting ~target_block_bytes
    # of input per grid step (per-step overhead ~0.35us; tiny blocks are
    # overhead-dominated).
    if per_batch_bytes >= target_block_bytes:
        bn = 1
    else:
        bn = int(max(1, min(N, target_block_bytes // per_batch_bytes)))
    grid = (pl.cdiv(N, bn),)

    # VMEM budget: double-buffered input + (tiny) double-buffered output
    # + headroom; clamp to [32 MiB, 64 MiB] so it is safe on v5e/v6e (128 MiB
    # physical) and v7x (64 MiB physical).
    block_in_bytes = bn * per_batch_bytes
    block_out_bytes = bn * C * itemsize
    needed = 2 * block_in_bytes + 2 * block_out_bytes + (4 << 20)
    vmem_limit = int(min(max(needed, 32 << 20), 64 << 20))
    # TODO(synk): for pathologically large per-batch slabs (C*H*W*itemsize
    # > ~28 MiB) add an HW-chunked grid axis with an f32 VMEM accumulator
    # instead of relying on a single full-(C,HW) block per step.

    # Output is (N, 1, C): last two block dims (1, C) equal the full array
    # dims, so any bn is legal, and the store is lane-dense across C.
    out = pl.pallas_call(
        functools.partial(_gap_kernel, inv_hw=inv_hw),
        out_shape=jax.ShapeDtypeStruct((N, 1, C), x.dtype),
        grid_spec=pltpu.PrefetchScalarGridSpec(
            num_scalar_prefetch=0,
            grid=grid,
            in_specs=[
                # Last two dims (C, HW) equal the full array dims -> tiling ok.
                pl.BlockSpec((bn, C, HW), lambda i: (i, 0, 0)),
            ],
            out_specs=pl.BlockSpec((bn, 1, C), lambda i: (i, 0, 0)),
        ),
        compiler_params=pltpu.CompilerParams(
            dimension_semantics=("parallel",),   # shards across v7x's 2 TCs
            vmem_limit_bytes=vmem_limit,
        ),
    )(x3)

    return out.reshape(N, C, 1, 1)


if __name__ == "__main__":
    key = jax.random.PRNGKey(0)
    N, C, H, W = 2, 4, 16, 16
    x = jax.random.normal(key, (N, C, H, W), dtype=jnp.float32)

    out = jax.block_until_ready(global_avg_pool2d(x))

    # Reference check (plain JAX) to validate semantics.
    ref = jnp.mean(x, axis=(2, 3), keepdims=True)
    assert out.shape == (N, C, 1, 1), out.shape
    assert jnp.allclose(out, ref, atol=1e-6, rtol=1e-6), "mismatch vs reference"

    print("KERNEL_OK")
</pallas_src>

<mosaic_0001>
module attributes {stable_mosaic.version = 11 : i64} {
  func.func @_gap_kernel(%arg0: i32, %arg1: memref<2x4x256xf32, #tpu.memory_space<vmem>>, %arg2: memref<2x1x4xf32, #tpu.memory_space<vmem>>) attributes {dimension_semantics = [#tpu.dimension_semantics<parallel>], iteration_bounds = array<i64: 1>, scalar_prefetch = 0 : i64, scratch_operands = 0 : i64, tpu.core_type = #tpu.core_type<tc>, window_params = [{transform_indices = @transform_0, window_bounds = array<i64: 2, 4, 256>}, {transform_indices = @transform_1, window_bounds = array<i64: 2, 1, 4>}]} {
    %c0 = arith.constant 0 : index
    %c0_0 = arith.constant 0 : index
    %c0_1 = arith.constant 0 : index
    %0 = vector.load %arg1[%c0, %c0_0, %c0_1] : memref<2x4x256xf32, #tpu.memory_space<vmem>>, vector<2x4x256xf32>
    %cst = arith.constant dense<0.000000e+00> : vector<2x4xf32>
    %1 = vector.multi_reduction <add>, %0, %cst [2] : vector<2x4x256xf32> to vector<2x4xf32>
    %cst_2 = arith.constant 3.906250e-03 : f32
    %2 = vector.broadcast %cst_2 : f32 to vector<2x4xf32>
    %3 = arith.mulf %1, %2 : vector<2x4xf32>
    %4 = vector.shape_cast %3 : vector<2x4xf32> to vector<2x1x4xf32>
    %c0_3 = arith.constant 0 : index
    %c0_4 = arith.constant 0 : index
    %c0_5 = arith.constant 0 : index
    %5 = vector.load %arg2[%c0_3, %c0_4, %c0_5] : memref<2x1x4xf32, #tpu.memory_space<vmem>>, vector<2x1x4xf32>
    tpu.vector_store %arg2[%c0_3, %c0_4, %c0_5], %4 {strides = array<i32>} : memref<2x1x4xf32, #tpu.memory_space<vmem>>, vector<2x1x4xf32>,
    return
  }
  func.func @transform_0(%arg0: i32) -> (i32, i32, i32) {
    %c0_i32 = arith.constant 0 : i32
    %c0_i32_0 = arith.constant 0 : i32
    %c0_i32_1 = arith.constant 0 : i32
    return %arg0, %c0_i32, %c0_i32_0 : i32, i32, i32
  }
  func.func @transform_1(%arg0: i32) -> (i32, i32, i32) {
    %c0_i32 = arith.constant 0 : i32
    %c0_i32_0 = arith.constant 0 : i32
    %c0_i32_1 = arith.constant 0 : i32
    return %arg0, %c0_i32, %c0_i32_0 : i32, i32, i32
  }
}

</mosaic_0001>

<bundles_post_ra>
// kernel: tpu_custom_call.1
= control target key start
LH: loop header
LB: loop body
LE: loop exit
PB: predicated region body
PF: predicated region fallthrough
CT: control target
= control target key end

     0   :  { %6 = vsyncpa [#allocation3], 0  ;;  %s152_s0 = inlined_call_operand.hbm [shape: f32[2,4,256], index: 0, kind: input, shape index: {}]   ;;  %s153_s1 = inlined_call_operand.hbm [shape: f32[2,1,4], index: 1, kind: output, shape index: {}]  }
   0x1   :  { %7 = vsyncpa [#allocation4], 0  ;;  %s130_s6 = smov [#allocation2]  }
   0x2   :  { %s13_s7 = sshll.u32 %s130_s6, 4  ;;  %s14_s7 = int_to_ptr.vmem [resolvable:$true] %s13_s7 }
   0x3   :  { %s94_s8 = scalar_lea.vmem %s14_s7, 256  ;;  %p99_p1 = scmp.lt.s32.totalorder %s14_s7, %s14_s7 }
   0x4   :  { %p95_p0 = scmp.ne.s32.totalorder %s14_s7, %s94_s8  ;;  %p100_p2 = scmp.lt.s32.totalorder %s94_s8, %s94_s8 }
   0x6   :  { %p101_p3 = por %p100_p2, %p99_p1 }
   0x8   :  { %p102_p4 = pnand %p101_p3, %p95_p0 }
   0xa   :  { %105 = shalt.err (!%p102_p4)
}
   0xb   :  { %s131_s9 = smov 128   ;;  %s132_s10 = smov 8  }
   0xc   :  { %19 = dma.hbm_to_vmem [thread:$0]  %s152_s0, 256, %s14_s7, [#allocation3], %s131_s9, %s131_s9, %s132_s10  }
   0xd   :  { %126 = dma.done.wait [#allocation3], 256  }
   0xe   :  { %127 = vsyncadd [#allocation3], 4294967040  ;;  %vm31_vm0 = vcmask 1043456   ;;  %v23_v0 = vld [vmem:[#allocation2] sm:$0xff]  ;;  %v24_v1 = vld [vmem:[#allocation2 + $0x8] sm:$0xff]  ;;  %v46_v10 = vlaneseq  ;;  %vm58_vm1 = vcmask 24576  }
   0xf   :  { %v27_v2 = vcombine.high %v23_v0, %v23_v0  ;;  %v32_v3 = vsel %vm31_vm0, %v23_v0, 0.0  ;;  %v28_v4 = vcombine.high %v24_v1, %v24_v1  ;;  %v37_v6 = vsel %vm31_vm0, %v24_v1, 0.0  ;;  %s133_s0 = smov [#allocation5]  }
  0x10   :  { %v47_v11 = vand.u32 127, %v46_v10  ;;  %v49_v12 = vshrl.u32 %v46_v10, 7  ;;  %s66_s13 = sshll.u32 %s133_s0, 4  ;;  %s67_s13 = int_to_ptr.vmem [resolvable:$true] %s66_s13 }
  0x11   :  { %v33_v5 = vsel %vm31_vm0, %v27_v2, 0.0  ;;  %v38_v7 = vsel %vm31_vm0, %v28_v4, 0.0  ;;  %s106_s14 = scalar_lea.vmem %s67_s13, 32  ;;  %p111_p6 = scmp.lt.s32.totalorder %s67_s13, %s67_s13 }
  0x12   :  { %v34_v8 = vadd.f32 %v33_v5, %v32_v3  ;;  %v39_v9 = vadd.f32 %v38_v7, %v37_v6  ;;  %v50_v13 = vsub.s32 %v47_v11, %v49_v12  ;;  %p107_p5 = scmp.ne.s32.totalorder %s67_s13, %s106_s14  ;;  %p112_p7 = scmp.lt.s32.totalorder %s106_s14, %s106_s14 }
  0x14   :  { %35 = vadd.xlane.f32.xlu0 %v34_v8  ;;  %p113_p8 = por %p112_p7, %p111_p6 }
  0x16   :  { %p114_p9 = pnand %p113_p8, %p107_p5 }
  0x18   :  { %40 = vadd.xlane.f32.xlu0 %v39_v9 }
  0x9d   :  { %v36_v14 = vpop.xlane.xlu0 %35 }
  0x9e   :  { %v42_v15 = vmul.f32 0.00390625, %v36_v14 }
  0xa0   :  { %v51_v16 = vrot.slane %v42_v15, %v50_v13 }
  0xa1   :  { %v41_v17 = vpop.xlane.xlu0 %40 }
  0xa2   :  { %59 = vst.msk [vmem:[#allocation5] sm:$0x1] %vm58_vm1, %v51_v16  ;;  %v43_v18 = vmul.f32 0.00390625, %v41_v17 }
  0xa4   :  { %v55_v19 = vrot.slane %v43_v18, %v50_v13 }
  0xa6   :  { %60 = vst.msk [vmem:[#allocation5 + $0x1] sm:$0x1] %vm58_vm1, %v55_v19 }
  0xa7   :  { %117 = shalt.err (!%p114_p9)
}
  0xa8   :  { %s134_s15 = smov 16   ;;  %s135_s16 = smov 1  }
  0xa9   :  { %72 = dma.vmem_to_hbm [thread:$0]  %s67_s13, 32, %s153_s1, [#allocation4], %s134_s15, %s134_s15, %s135_s16  }
  0xaa   :  { %128 = dma.done.wait [#allocation4], 32  }
  0xab   :  { %129 = vsyncadd [#allocation4], 4294967264 }
  0xac   :  { %76 = vsyncpa [#allocation3], 1 }
  0xad   :  { %77 = vsyncpa [#allocation4], 1 }

</bundles_post_ra>
